<compile_context>
chip_gen: v6e
topology: v6e:2x2x1
jax: 0.10.0
libtpu: 0.0.40
codegen_flags: <defaults>
</compile_context>

<pallas_src>
import functools

import jax
import jax.numpy as jnp
from jax.experimental import pallas as pl
from jax.experimental.pallas import tpu as pltpu


def _round_up(a: int, m: int) -> int:
    return ((a + m - 1) // m) * m


def qnet_kernel(x_ref, w1_ref, b1_ref, w2_ref, b2_ref, w3_ref, b3_ref, o_ref):
    # Matmul operands in the weight dtype (bf16 by default); accumulate in f32.
    cdt = w1_ref.dtype

    # fc1 + relu (elementwise math stays f32 — v5e has no bf16 VPU path).
    h1 = jnp.dot(x_ref[...].astype(cdt), w1_ref[...],
                 preferred_element_type=jnp.float32)
    h1 = jnp.maximum(h1 + b1_ref[...], 0.0)

    # fc2 + relu (dominant MXU work: tm x hidden x hidden).
    h2 = jnp.dot(h1.astype(cdt), w2_ref[...],
                 preferred_element_type=jnp.float32)
    h2 = jnp.maximum(h2 + b2_ref[...], 0.0)

    # fc3 (no activation). Output block is lane-dense (128-padded at init).
    out = jnp.dot(h2.astype(cdt), w3_ref[...],
                  preferred_element_type=jnp.float32)
    o_ref[...] = (out + b3_ref[...]).astype(o_ref.dtype)


@functools.partial(jax.jit, static_argnames=("action_dim", "tm", "out_dtype"))
def qnetwork_forward(x, params, *, action_dim, tm=None, out_dtype=jnp.float32):
    """x: (B, state_dim) f32. params: dict from init_params (pre-padded)."""
    w1, b1, w2, b2, w3, b3 = (
        params["w1"], params["b1"], params["w2"],
        params["b2"], params["w3"], params["b3"],
    )
    B = x.shape[0]
    in_pad, hidden_dim = w1.shape
    out_pad = w3.shape[1]

    # fc1 in-features were padded to a multiple of 8 at init; pad x only if the
    # env's state_dim is itself unaligned (no-op for aligned state dims).
    if x.shape[1] != in_pad:
        x = jnp.pad(x, ((0, 0), (0, in_pad - x.shape[1])))

    # --- Batch tile: large enough to hide per-step overhead, capped so the
    #     grid has >= 2 steps when possible (lets "parallel" shard across
    #     v7x's two TensorCores; harmless on v5e/v6e). ---
    if tm is None:
        if B < 8:
            tm = B                                   # block == full batch dim
        else:
            tm = min(2048, _round_up(B, 8), _round_up(pl.cdiv(B, 2), 8))
    else:
        tm = min(_round_up(tm, 8), _round_up(B, 8))
    grid = (pl.cdiv(B, tm),)

    # Advisory cost hint so XLA can overlap this call with surrounding ops.
    out_isize = jnp.dtype(out_dtype).itemsize
    flops = 2 * B * (in_pad * hidden_dim
                     + hidden_dim * hidden_dim
                     + hidden_dim * out_pad)
    wbytes = sum(int(a.size) * a.dtype.itemsize
                 for a in (w1, b1, w2, b2, w3, b3))
    bytes_accessed = (wbytes + int(x.size) * x.dtype.itemsize
                      + B * out_pad * out_isize)
    cost = pl.CostEstimate(flops=flops, transcendentals=0,
                           bytes_accessed=bytes_accessed)

    # VMEM budget: resident weights + double-buffered x/out tiles + f32
    # intermediates, with 2x headroom; capped at v7x's 64 MiB physical VMEM.
    pipeline_bytes = 2 * tm * (in_pad * x.dtype.itemsize + out_pad * out_isize)
    inter_bytes = 2 * tm * hidden_dim * 4
    needed = wbytes + pipeline_bytes + inter_bytes
    vmem_limit = int(min(64 << 20, max(32 << 20, 2 * needed)))

    const = lambda i: (0, 0)  # weights/biases: same block every step -> resident
    out_padded = pl.pallas_call(
        qnet_kernel,
        out_shape=jax.ShapeDtypeStruct((B, out_pad), out_dtype),
        grid=grid,
        in_specs=[
            pl.BlockSpec((tm, in_pad), lambda i: (i, 0)),             # x tile
            pl.BlockSpec((in_pad, hidden_dim), const),                # w1
            pl.BlockSpec((1, hidden_dim), const),                     # b1
            pl.BlockSpec((hidden_dim, hidden_dim), const),            # w2
            pl.BlockSpec((1, hidden_dim), const),                     # b2
            pl.BlockSpec((hidden_dim, out_pad), const),               # w3
            pl.BlockSpec((1, out_pad), const),                        # b3
        ],
        out_specs=pl.BlockSpec((tm, out_pad), lambda i: (i, 0)),
        compiler_params=pltpu.CompilerParams(
            dimension_semantics=("parallel",),       # 2x on v7x's dual TC
            vmem_limit_bytes=vmem_limit),
        cost_estimate=cost,
    )(x, w1, b1, w2, b2, w3, b3)

    return out_padded[:, :action_dim]


def init_params(key, state_dim, action_dim, hidden_dim=256,
                weight_dtype=jnp.bfloat16):
    """PyTorch-Linear-style init (uniform +-1/sqrt(fan_in)).

    Weights are stored pre-transposed (in_features, out_features), pre-padded
    once here (fc1 rows to a multiple of 8, fc3 cols to a multiple of 128) so
    the forward path has no per-call padding ops. Biases stay f32 (elementwise
    math in-kernel is f32); weights default to bf16 for native MXU rate and
    half the HBM/VMEM traffic.
    """
    in_pad = _round_up(max(state_dim, 1), 8)
    out_pad = max(128, _round_up(action_dim, 128))
    ks = jax.random.split(key, 6)

    def lin(kw, kb, fan_in, fan_out, pad_in, pad_out):
        bound = 1.0 / (fan_in ** 0.5)
        w = jax.random.uniform(kw, (fan_in, fan_out), jnp.float32, -bound, bound)
        b = jax.random.uniform(kb, (1, fan_out), jnp.float32, -bound, bound)
        wp = jnp.zeros((pad_in, pad_out), jnp.float32).at[:fan_in, :fan_out].set(w)
        bp = jnp.zeros((1, pad_out), jnp.float32).at[:, :fan_out].set(b)
        return wp.astype(weight_dtype), bp

    w1, b1 = lin(ks[0], ks[1], state_dim, hidden_dim, in_pad, hidden_dim)
    w2, b2 = lin(ks[2], ks[3], hidden_dim, hidden_dim, hidden_dim, hidden_dim)
    w3, b3 = lin(ks[4], ks[5], hidden_dim, action_dim, hidden_dim, out_pad)
    return {"w1": w1, "b1": b1, "w2": w2, "b2": b2, "w3": w3, "b3": b3}


def qnetwork_ref(x, p, action_dim):
    """Pure-JAX reference mimicking the kernel's precision (cast operands to
    the weight dtype, accumulate in f32)."""
    in_pad = p["w1"].shape[0]
    if x.shape[1] != in_pad:
        x = jnp.pad(x, ((0, 0), (0, in_pad - x.shape[1])))
    cdt = p["w1"].dtype
    h1 = jax.nn.relu(jnp.dot(x.astype(cdt), p["w1"],
                             preferred_element_type=jnp.float32) + p["b1"])
    h2 = jax.nn.relu(jnp.dot(h1.astype(cdt), p["w2"],
                             preferred_element_type=jnp.float32) + p["b2"])
    out = jnp.dot(h2.astype(cdt), p["w3"],
                  preferred_element_type=jnp.float32) + p["b3"]
    return out[:, :action_dim]


if __name__ == "__main__":
    key = jax.random.PRNGKey(0)
    k_x, k_p = jax.random.split(key)

    # Small, module-consistent shapes for the correctness check.
    batch, state_dim, action_dim, hidden_dim = 8, 8, 4, 32
    x = jax.random.normal(k_x, (batch, state_dim), jnp.float32)

    # f32 weight path: tight tolerance vs reference.
    p32 = init_params(k_p, state_dim, action_dim, hidden_dim,
                      weight_dtype=jnp.float32)
    out32 = jax.block_until_ready(
        qnetwork_forward(x, p32, action_dim=action_dim))
    ref32 = qnetwork_ref(x, p32, action_dim)
    assert out32.shape == (batch, action_dim)
    assert jnp.allclose(out32, ref32, atol=1e-5, rtol=1e-5), "f32 mismatch"

    # bf16 weight path (default): loose tolerance vs bf16-mimicking reference.
    pbf = init_params(k_p, state_dim, action_dim, hidden_dim)  # bf16 default
    outbf = jax.block_until_ready(
        qnetwork_forward(x, pbf, action_dim=action_dim))
    refbf = qnetwork_ref(x, pbf, action_dim)
    assert outbf.shape == (batch, action_dim)
    assert jnp.allclose(outbf, refbf, atol=2e-2, rtol=2e-2), "bf16 mismatch"

    print("KERNEL_OK")
</pallas_src>

<mosaic_0001>
module attributes {stable_mosaic.version = 11 : i64} {
  func.func @qnet_kernel(%arg0: i32, %arg1: memref<8x8xf32, #tpu.memory_space<vmem>>, %arg2: memref<8x32xf32, #tpu.memory_space<vmem>>, %arg3: memref<1x32xf32, #tpu.memory_space<vmem>>, %arg4: memref<32x32xf32, #tpu.memory_space<vmem>>, %arg5: memref<1x32xf32, #tpu.memory_space<vmem>>, %arg6: memref<32x128xf32, #tpu.memory_space<vmem>>, %arg7: memref<1x128xf32, #tpu.memory_space<vmem>>, %arg8: memref<8x128xf32, #tpu.memory_space<vmem>>) attributes {dimension_semantics = [#tpu.dimension_semantics<parallel>], iteration_bounds = array<i64: 1>, scalar_prefetch = 0 : i64, scratch_operands = 0 : i64, tpu.core_type = #tpu.core_type<tc>, window_params = [{transform_indices = @transform_0, window_bounds = array<i64: 8, 8>}, {pipeline_mode = #tpu.pipeline_mode<synchronous>, transform_indices = @transform_1, window_bounds = array<i64: 8, 32>}, {pipeline_mode = #tpu.pipeline_mode<synchronous>, transform_indices = @transform_2, window_bounds = array<i64: 1, 32>}, {pipeline_mode = #tpu.pipeline_mode<synchronous>, transform_indices = @transform_3, window_bounds = array<i64: 32, 32>}, {pipeline_mode = #tpu.pipeline_mode<synchronous>, transform_indices = @transform_4, window_bounds = array<i64: 1, 32>}, {pipeline_mode = #tpu.pipeline_mode<synchronous>, transform_indices = @transform_5, window_bounds = array<i64: 32, 128>}, {pipeline_mode = #tpu.pipeline_mode<synchronous>, transform_indices = @transform_6, window_bounds = array<i64: 1, 128>}, {transform_indices = @transform_7, window_bounds = array<i64: 8, 128>}]} {
    %c0 = arith.constant 0 : index
    %c0_0 = arith.constant 0 : index
    %0 = vector.load %arg1[%c0, %c0_0] : memref<8x8xf32, #tpu.memory_space<vmem>>, vector<8x8xf32>
    %c0_1 = arith.constant 0 : index
    %c0_2 = arith.constant 0 : index
    %1 = vector.load %arg2[%c0_1, %c0_2] : memref<8x32xf32, #tpu.memory_space<vmem>>, vector<8x32xf32>
    %cst = arith.constant dense<0.000000e+00> : vector<8x32xf32>
    %2 = tpu.matmul %0, %1, %cst {dimension_numbers = #tpu.dot_dimension_numbers<[1], [0], [0], [1], [0, 0, 1, 1], [], []>} : vector<8x8xf32>, vector<8x32xf32>, vector<8x32xf32> -> vector<8x32xf32>
    %c0_3 = arith.constant 0 : index
    %c0_4 = arith.constant 0 : index
    %3 = vector.load %arg3[%c0_3, %c0_4] : memref<1x32xf32, #tpu.memory_space<vmem>>, vector<1x32xf32>
    %4 = vector.broadcast %3 : vector<1x32xf32> to vector<8x32xf32>
    %5 = arith.addf %2, %4 : vector<8x32xf32>
    %cst_5 = arith.constant 0.000000e+00 : f32
    %6 = vector.broadcast %cst_5 : f32 to vector<8x32xf32>
    %7 = arith.maximumf %5, %6 : vector<8x32xf32>
    %c0_6 = arith.constant 0 : index
    %c0_7 = arith.constant 0 : index
    %8 = vector.load %arg4[%c0_6, %c0_7] : memref<32x32xf32, #tpu.memory_space<vmem>>, vector<32x32xf32>
    %cst_8 = arith.constant dense<0.000000e+00> : vector<8x32xf32>
    %9 = tpu.matmul %7, %8, %cst_8 {dimension_numbers = #tpu.dot_dimension_numbers<[1], [0], [0], [1], [0, 0, 1, 1], [], []>} : vector<8x32xf32>, vector<32x32xf32>, vector<8x32xf32> -> vector<8x32xf32>
    %c0_9 = arith.constant 0 : index
    %c0_10 = arith.constant 0 : index
    %10 = vector.load %arg5[%c0_9, %c0_10] : memref<1x32xf32, #tpu.memory_space<vmem>>, vector<1x32xf32>
    %11 = vector.broadcast %10 : vector<1x32xf32> to vector<8x32xf32>
    %12 = arith.addf %9, %11 : vector<8x32xf32>
    %cst_11 = arith.constant 0.000000e+00 : f32
    %13 = vector.broadcast %cst_11 : f32 to vector<8x32xf32>
    %14 = arith.maximumf %12, %13 : vector<8x32xf32>
    %c0_12 = arith.constant 0 : index
    %c0_13 = arith.constant 0 : index
    %15 = vector.load %arg6[%c0_12, %c0_13] : memref<32x128xf32, #tpu.memory_space<vmem>>, vector<32x128xf32>
    %cst_14 = arith.constant dense<0.000000e+00> : vector<8x128xf32>
    %16 = tpu.matmul %14, %15, %cst_14 {dimension_numbers = #tpu.dot_dimension_numbers<[1], [0], [0], [1], [0, 0, 1, 1], [], []>} : vector<8x32xf32>, vector<32x128xf32>, vector<8x128xf32> -> vector<8x128xf32>
    %c0_15 = arith.constant 0 : index
    %c0_16 = arith.constant 0 : index
    %17 = vector.load %arg7[%c0_15, %c0_16] : memref<1x128xf32, #tpu.memory_space<vmem>>, vector<1x128xf32>
    %18 = vector.broadcast %17 : vector<1x128xf32> to vector<8x128xf32>
    %19 = arith.addf %16, %18 : vector<8x128xf32>
    %c0_17 = arith.constant 0 : index
    %c0_18 = arith.constant 0 : index
    %20 = vector.load %arg8[%c0_17, %c0_18] : memref<8x128xf32, #tpu.memory_space<vmem>>, vector<8x128xf32>
    tpu.vector_store %arg8[%c0_17, %c0_18], %19 {strides = array<i32>} : memref<8x128xf32, #tpu.memory_space<vmem>>, vector<8x128xf32>,
    return
  }
  func.func @transform_0(%arg0: i32) -> (i32, i32) {
    %c0_i32 = arith.constant 0 : i32
    %c0_i32_0 = arith.constant 0 : i32
    return %arg0, %c0_i32 : i32, i32
  }
  func.func @transform_1(%arg0: i32) -> (i32, i32) {
    %c0_i32 = arith.constant 0 : i32
    %c0_i32_0 = arith.constant 0 : i32
    %c0_i32_1 = arith.constant 0 : i32
    return %c0_i32, %c0_i32_0 : i32, i32
  }
  func.func @transform_2(%arg0: i32) -> (i32, i32) {
    %c0_i32 = arith.constant 0 : i32
    %c0_i32_0 = arith.constant 0 : i32
    %c0_i32_1 = arith.constant 0 : i32
    return %c0_i32, %c0_i32_0 : i32, i32
  }
  func.func @transform_3(%arg0: i32) -> (i32, i32) {
    %c0_i32 = arith.constant 0 : i32
    %c0_i32_0 = arith.constant 0 : i32
    %c0_i32_1 = arith.constant 0 : i32
    return %c0_i32, %c0_i32_0 : i32, i32
  }
  func.func @transform_4(%arg0: i32) -> (i32, i32) {
    %c0_i32 = arith.constant 0 : i32
    %c0_i32_0 = arith.constant 0 : i32
    %c0_i32_1 = arith.constant 0 : i32
    return %c0_i32, %c0_i32_0 : i32, i32
  }
  func.func @transform_5(%arg0: i32) -> (i32, i32) {
    %c0_i32 = arith.constant 0 : i32
    %c0_i32_0 = arith.constant 0 : i32
    %c0_i32_1 = arith.constant 0 : i32
    return %c0_i32, %c0_i32_0 : i32, i32
  }
  func.func @transform_6(%arg0: i32) -> (i32, i32) {
    %c0_i32 = arith.constant 0 : i32
    %c0_i32_0 = arith.constant 0 : i32
    %c0_i32_1 = arith.constant 0 : i32
    return %c0_i32, %c0_i32_0 : i32, i32
  }
  func.func @transform_7(%arg0: i32) -> (i32, i32) {
    %c0_i32 = arith.constant 0 : i32
    %c0_i32_0 = arith.constant 0 : i32
    return %arg0, %c0_i32 : i32, i32
  }
}

</mosaic_0001>

<bundles_post_ra>
// kernel: qnetwork_forward.1
= control target key start
LH: loop header
LB: loop body
LE: loop exit
PB: predicated region body
PF: predicated region fallthrough
CT: control target
= control target key end

     0   :  { %12 = vsyncpa [#allocation3], 0  ;;  %s552_s0 = inlined_call_operand.hbm [shape: f32[8,8], index: 0, kind: input, shape index: {}]   ;;  %s553_s1 = inlined_call_operand.hbm [shape: f32[8,32], index: 1, kind: input, shape index: {}]   ;;  %s554_s2 = inlined_call_operand.vmem [shape: f32[1,32], index: 2, kind: input, shape index: {}]   ;;  %s555_s3 = inlined_call_operand.hbm [shape: f32[32,32], index: 3, kind: input, shape index: {}]   ;;  %s556_s4 = inlined_call_operand.vmem [shape: f32[1,32], index: 4, kind: input, shape index: {}]   ;;  %s557_s5 = inlined_call_operand.hbm [shape: f32[32,128], index: 5, kind: input, shape index: {}]   ;;  %s558_s6 = inlined_call_operand.vmem [shape: f32[1,128], index: 6, kind: input, shape index: {}]   ;;  %s559_s7 = inlined_call_operand.vmem [shape: f32[8,128], index: 7, kind: output, shape index: {}]  }
   0x1   :  { %13 = vsyncpa [#allocation5], 0 }
   0x2   :  { %14 = vsyncpa [#allocation8], 0  ;;  %s478_s24 = smov [#allocation4]   ;;  %s479_s26 = smov [#allocation2]  }
   0x3   :  { %s31_s25 = sshll.u32 %s478_s24, 4  ;;  %s21_s27 = sshll.u32 %s479_s26, 4  ;;  %s32_s25 = int_to_ptr.vmem [resolvable:$true] %s31_s25  ;;  %s22_s27 = int_to_ptr.vmem [resolvable:$true] %s21_s27 }
   0x4   :  { %s400_s28 = scalar_lea.vmem %s32_s25, 128  ;;  %p405_p1 = scmp.lt.s32.totalorder %s32_s25, %s32_s25 }
   0x5   :  { %p401_p0 = scmp.ne.s32.totalorder %s32_s25, %s400_s28  ;;  %p406_p2 = scmp.lt.s32.totalorder %s400_s28, %s400_s28 }
   0x7   :  { %p407_p3 = por %p406_p2, %p405_p1 }
   0x9   :  { %p408_p4 = pnand %p407_p3, %p401_p0 }
   0xb   :  { %411 = shalt.err (!%p408_p4)
}
   0xc   :  { %34 = dma.hbm_to_vmem [thread:$0]  %s553_s1, 128, %s32_s25, [#allocation5]  }
   0xd   :  { %s420_s8 = scalar_lea.vmem %s22_s27, 128  ;;  %p425_p6 = scmp.lt.s32.totalorder %s22_s27, %s22_s27 }
   0xe   :  { %p421_p5 = scmp.ne.s32.totalorder %s22_s27, %s420_s8  ;;  %p426_p7 = scmp.lt.s32.totalorder %s420_s8, %s420_s8 }
  0x10   :  { %p427_p8 = por %p426_p7, %p425_p6 }
  0x12   :  { %p428_p9 = pnand %p427_p8, %p421_p5 }
  0x14   :  { %431 = shalt.err (!%p428_p9)
}
  0x15   :  { %24 = dma.hbm_to_vmem [thread:$0]  %s552_s0, 128, %s22_s27, [#allocation3]  }
  0x16   :  { %s480_s11 = smov [#allocation6]  }
  0x17   :  { %s42_s12 = sshll.u32 %s480_s11, 4  ;;  %s43_s12 = int_to_ptr.vmem [resolvable:$true] %s42_s12 }
  0x18   :  { %s440_s13 = scalar_lea.vmem %s43_s12, 512  ;;  %p445_p11 = scmp.lt.s32.totalorder %s43_s12, %s43_s12 }
  0x19   :  { %p441_p10 = scmp.ne.s32.totalorder %s43_s12, %s440_s13  ;;  %p446_p12 = scmp.lt.s32.totalorder %s440_s13, %s440_s13 }
  0x1b   :  { %p447_p13 = por %p446_p12, %p445_p11 }
  0x1d   :  { %p448_p0 = pnand %p447_p13, %p441_p10 }
  0x1f   :  { %451 = shalt.err (!%p448_p0)
}
  0x20   :  { %s481_s1 = smov 128   ;;  %s482_s14 = smov 8  }
  0x21   :  { %48 = dma.hbm_to_vmem [thread:$0]  %s555_s3, 512, %s43_s12, [#allocation5], %s481_s1, %s481_s1, %s482_s14  }
  0x22   :  { %s483_s17 = smov [#allocation7]  }
  0x23   :  { %s56_s18 = sshll.u32 %s483_s17, 4  ;;  %s57_s18 = int_to_ptr.vmem [resolvable:$true] %s56_s18 }
  0x24   :  { %s460_s0 = scalar_lea.vmem %s57_s18, 512  ;;  %p465_p2 = scmp.lt.s32.totalorder %s57_s18, %s57_s18 }
  0x25   :  { %p461_p1 = scmp.ne.s32.totalorder %s57_s18, %s460_s0  ;;  %p466_p3 = scmp.lt.s32.totalorder %s460_s0, %s460_s0 }
  0x27   :  { %p467_p4 = por %p466_p3, %p465_p2 }
  0x29   :  { %p468_p5 = pnand %p467_p4, %p461_p1 }
  0x2b   :  { %471 = shalt.err (!%p468_p5)
}
  0x2c   :  { %62 = dma.hbm_to_vmem [thread:$0]  %s557_s5, 512, %s57_s18, [#allocation8], %s481_s1, %s481_s1, %s482_s14  }
  0x2d   :  { %472 = dma.done.wait [#allocation3], 128  }
  0x2e   :  { %473 = vsyncadd [#allocation3], 4294967168 }
  0x2f   :  { %474 = dma.done.wait [#allocation5], 640  }
  0x30   :  { %475 = vsyncadd [#allocation5], 4294966656 }
  0x31   :  { %476 = dma.done.wait [#allocation8], 512  }
  0x32   :  { %477 = vsyncadd [#allocation8], 4294966784  ;;  %v484_v0 = vmov 0.0   ;;  %vm485_vm0 = vmmov 0   ;;  %vm86_vm1 = vcmask 64512   ;;  %v78_v1 = vld [vmem:[#allocation4] sm:$0xff] }
  0x33   :  { %357 = vmatprep.subr.mxu0 %v484_v0  ;;  %359 = vmatprep.mubr.msk.f32.mxu0 %vm485_vm0, %v484_v0  ;;  %v77_v2 = vld [vmem:[#allocation2] sm:$0xff]  ;;  %v164_v3 = vld [vmem:[#allocation6 + $0x18] sm:$0xff]  ;;  %v162_v5 = vld [vmem:[#allocation6 + $0x8] sm:$0xff]  ;;  %vm172_vm2 = vcmask 261120  }
  0x34   :  { %362 = vmatprep.subr.mxu1 %v484_v0  ;;  %370 = vmatprep.mubr.msk.f32.mxu1 %vm485_vm0, %v484_v0  ;;  %v163_v4 = vld [vmem:[#allocation6 + $0x10] sm:$0xff]  ;;  %v161_v6 = vld [vmem:[#allocation6] sm:$0xff]  ;;  %v250_v7 = vld [vmem:[#allocation7 + $0x18] sm:$0xff] }
  0x35   :  { %358 = vmatpush3.msra.mxu0 %v78_v1  ;;  %363 = vmatpush3.msra.mxu1 %v164_v3  ;;  %v339_v8 = vld [vmem:[%s554_s2] ss:$0 sm:$0xff]  ;;  %v248_v14 = vld [vmem:[#allocation7 + $0x8] sm:$0xff]  ;;  %v247_v15 = vld [vmem:[#allocation7] sm:$0xff] }
  0x36   :  { %360 = vmatmul.mubr.msk.f32.vlgmr.msra.gmra.mxu0 %vm86_vm1, %v77_v2  ;;  %364 = vmatprep.subr.mxu1 %v484_v0  ;;  %v249_v13 = vld [vmem:[#allocation7 + $0x10] sm:$0xff] }
  0x37   :  { %373 = vmatprep.subr.mxu0 %v484_v0  ;;  %381 = vmatprep.mubr.msk.f32.mxu0 %vm485_vm0, %v484_v0  ;;  %v341_v16 = vld [vmem:[%s556_s4] ss:$0 sm:$0xff] }
  0x38   :  { %365 = vmatpush3.msra.mxu1 %v163_v4  ;;  %374 = vmatpush3.msra.mxu0 %v250_v7  ;;  %v343_v21 = vld [vmem:[%s558_s6] ss:$0 sm:$0xff] }
  0x39   :  { %366 = vmatprep.subr.mxu1 %v484_v0  ;;  %375 = vmatprep.subr.mxu0 %v484_v0 }
  0x3a   :  { %367 = vmatpush3.msra.mxu1 %v162_v5  ;;  %376 = vmatpush3.msra.mxu0 %v249_v13 }
  0x3b   :  { %368 = vmatprep.subr.mxu1 %v484_v0  ;;  %377 = vmatprep.subr.mxu0 %v484_v0 }
  0x3c   :  { %369 = vmatpush3.msra.mxu1 %v161_v6  ;;  %378 = vmatpush3.msra.mxu0 %v248_v14 }
  0x3d   :  { %379 = vmatprep.subr.mxu0 %v484_v0 }
  0x3e   :  { %380 = vmatpush3.msra.mxu0 %v247_v15 }
  0xf6   :  { %v156_v9 = vpop.f32.mrf.mxu0 }
  0xf7   :  { %v157_v10 = vadd.f32 %v339_v8, %v156_v9 }
  0xf8   :  { %v361_v11 = vpop.f32.mrf.mxu0 }
  0xf9   :  { %v160_v12 = vmax.f32 %v157_v10, 0.0 }
  0xfb   :  { %371 = vmatmul.mubr.msk.f32.vlgmr.msra.gmra.mxu1 %vm172_vm2, %v160_v12 }
 0x1bb   :  { %v242_v17 = vpop.f32.mrf.mxu1 }
 0x1bc   :  { %v243_v18 = vadd.f32 %v341_v16, %v242_v17 }
 0x1bd   :  { %v372_v19 = vpop.f32.mrf.mxu1 }
 0x1be   :  { %v246_v20 = vmax.f32 %v243_v18, 0.0 }
 0x1c0   :  { %382 = vmatmul.mubr.msk.f32.vlgmr.msra.gmra.mxu0 %vm172_vm2, %v246_v20 }
 0x280   :  { %v327_v22 = vpop.f32.mrf.mxu0 }
 0x281   :  { %v328_v23 = vadd.f32 %v343_v21, %v327_v22 }
 0x282   :  { %v383_v24 = vpop.f32.mrf.mxu0 }
 0x283   :  { %331 = vst [vmem:[%s559_s7] sm:$0xff] %v328_v23 }
 0x284   :  { %336 = vsyncpa [#allocation3], 1 }
 0x285   :  { %337 = vsyncpa [#allocation5], 1 }
 0x286   :  { %338 = vsyncpa [#allocation8], 1 }

</bundles_post_ra>
